<compile_context>
chip_gen: v7x
topology: tpu7x:2x2x1
jax: 0.10.0
libtpu: 0.0.40
codegen_flags: <defaults>
</compile_context>

<pallas_src>
import functools

import jax
import jax.numpy as jnp
from jax import lax
from jax.experimental import pallas as pl
from jax.experimental.pallas import tpu as pltpu


def _pool_kernel(*refs, pool_size, height, has_halo):
    """One (Pb, TH, W) block of the fused (N*C, H, W) view.

    refs = (x_ref[, top_ref, bot_ref], o_ref)
      x_ref:   (Pb, TH, W) native dtype, rows [h*TH, (h+1)*TH).
      top_ref: (Pb, 8, W)  rows [h*TH-8, h*TH)        (only when has_halo).
      bot_ref: (Pb, 8, W)  rows [(h+1)*TH, (h+1)*TH+8) (only when has_halo).
      o_ref:   (Pb, TH, W) native dtype output block.
    """
    if has_halo:
        x_ref, top_ref, bot_ref, o_ref = refs
    else:
        x_ref, o_ref = refs

    k = pool_size
    pad = k // 2
    xn = x_ref[...]                                   # (Pb, TH, W) native dtype
    Pb, TH, W = xn.shape

    def hpass(v):
        """k-tap horizontal (lane axis) sum with zero boundary, f32 accum."""
        rows = v.shape[1]
        zc = jnp.zeros((Pb, rows, pad), jnp.float32)
        vw = jnp.concatenate([zc, v.astype(jnp.float32), zc], axis=2)
        s = vw[:, :, 0:W]
        for d in range(1, k):
            s = s + vw[:, :, d:d + W]
        return s                                       # (Pb, rows, W) f32

    tmp = hpass(xn)                                    # horizontal row sums

    if has_halo:
        h = pl.program_id(1)
        n_h = pl.num_programs(1)
        top = top_ref[...]
        bot = bot_ref[...]
        # Use only the `pad` rows adjacent to this tile; zero them at the
        # image borders (first / last H tile) -> count_include_pad semantics.
        top_t = hpass(top[:, 8 - pad:, :]) * jnp.where(h > 0, 1.0, 0.0)
        bot_t = hpass(bot[:, 0:pad, :]) * jnp.where(h < n_h - 1, 1.0, 0.0)
        row0 = h * TH
    else:
        zr = jnp.zeros((Pb, pad, W), jnp.float32)
        top_t = zr
        bot_t = zr
        row0 = 0

    # Vertical (sublane axis) k-tap pass over the halo-extended rows.
    ext = jnp.concatenate([top_t, tmp, bot_t], axis=1)  # (Pb, TH + 2*pad, W)
    acc = ext[:, 0:TH, :]
    for d in range(1, k):
        acc = acc + ext[:, d:d + TH, :]

    # count_include_pad=False: separable valid counts computed in-kernel.
    row = lax.broadcasted_iota(jnp.int32, (1, TH, W), 1) + row0
    col = lax.broadcasted_iota(jnp.int32, (1, TH, W), 2)
    cnt_h = jnp.minimum(row + pad, height - 1) - jnp.maximum(row - pad, 0) + 1
    cnt_w = jnp.minimum(col + pad, W - 1) - jnp.maximum(col - pad, 0) + 1
    inv = 1.0 / (cnt_h * cnt_w).astype(jnp.float32)      # (1, TH, W)

    o_ref[...] = (acc * inv - xn.astype(jnp.float32)).astype(o_ref.dtype)


def pooling_forward(x, pool_size=3, *, block_rows=None):
    """x: (N, C, H, W). Returns AvgPool2d(count_include_pad=False)(x) - x."""
    assert pool_size % 2 == 1, "only odd pool_size preserves the spatial shape"
    N, C, H, W = x.shape
    if pool_size == 1:                       # avgpool(1) is the identity
        return jnp.zeros_like(x)
    P = N * C
    pad = pool_size // 2
    x3 = x.reshape(P, H, W)                  # free view: W on lanes, H on sublanes

    # ---- chip-aware budgets --------------------------------------------------
    try:
        vmem_cap = int(pltpu.get_tpu_info().vmem_capacity_bytes)
    except Exception:
        vmem_cap = 64 * 1024 * 1024          # conservative fallback
    small_vmem = vmem_cap < 100 * 1024 * 1024            # v7x-like (64 MiB / TC)
    vmem_limit = (32 if small_vmem else 64) * 1024 * 1024
    blk_budget = (2 if small_vmem else 4) * 1024 * 1024  # target f32 block bytes

    # ---- choose H tile (only when a full plane would blow the budget) --------
    plane_f32 = H * W * 4
    TH = H
    if (block_rows is not None and 0 < block_rows < H and H % block_rows == 0
            and block_rows % 8 == 0 and pad <= 8):
        TH = block_rows                      # explicit override (used in tests)
    elif plane_f32 > blk_budget and H % 8 == 0 and pad <= 8:
        cand = min(H, max(8, (blk_budget // (W * 4)) // 8 * 8))
        while cand >= 8 and H % cand != 0:
            cand -= 8
        if cand >= 8:
            TH = cand
    # TODO(synk): planes whose H has no suitable multiple-of-8 divisor are
    # processed as a single H block and may exceed the VMEM budget for
    # extremely large spatial sizes.
    n_h = H // TH

    # ---- choose fused-(N*C) leading-dim tile ----------------------------------
    Pb = max(1, min(P, blk_budget // (TH * W * 4)))
    if small_vmem:                           # v7x megacore: keep >= 8 grid steps
        Pb = min(Pb, max(1, pl.cdiv(P, 8)))
    n_p = pl.cdiv(P, Pb)

    kernel = functools.partial(_pool_kernel, pool_size=pool_size, height=H,
                               has_halo=n_h > 1)

    in_specs = [pl.BlockSpec((Pb, TH, W), lambda p, h: (p, h, 0))]
    inputs = [x3]
    if n_h > 1:
        thb = TH // 8                        # halo blocks are 8 rows (>= pad)
        n_hb = H // 8
        in_specs.append(pl.BlockSpec(
            (Pb, 8, W), lambda p, h: (p, jnp.maximum(h * thb - 1, 0), 0)))
        in_specs.append(pl.BlockSpec(
            (Pb, 8, W), lambda p, h: (p, jnp.minimum((h + 1) * thb, n_hb - 1), 0)))
        inputs += [x3, x3]

    out = pl.pallas_call(
        kernel,
        out_shape=jax.ShapeDtypeStruct((P, H, W), x.dtype),
        grid=(n_p, n_h),
        in_specs=in_specs,
        out_specs=pl.BlockSpec((Pb, TH, W), lambda p, h: (p, h, 0)),
        compiler_params=pltpu.CompilerParams(
            dimension_semantics=("parallel", "parallel"),
            vmem_limit_bytes=vmem_limit,
        ),
    )(*inputs)

    return out.reshape(N, C, H, W)


def _reference(x, pool_size=3):
    """Pure-JAX reference of AvgPool2d(count_include_pad=False)(x) - x."""
    pad = pool_size // 2
    H, W = x.shape[-2:]
    xp = jnp.pad(x, ((0, 0), (0, 0), (pad, pad), (pad, pad)))
    op = jnp.pad(jnp.ones_like(x), ((0, 0), (0, 0), (pad, pad), (pad, pad)))
    s = jnp.zeros_like(x)
    c = jnp.zeros_like(x)
    for dy in range(pool_size):
        for dx in range(pool_size):
            s = s + xp[..., dy:dy + H, dx:dx + W]
            c = c + op[..., dy:dy + H, dx:dx + W]
    return s / c - x


if __name__ == "__main__":
    # Test 1: default path (full plane per block), small canonical shape.
    x = jax.random.normal(jax.random.PRNGKey(0), (2, 4, 16, 16), dtype=jnp.float32)
    y = jax.block_until_ready(pooling_forward(x, pool_size=3))
    assert y.shape == x.shape and y.dtype == x.dtype
    assert jnp.allclose(y, _reference(x, pool_size=3), atol=1e-5, rtol=1e-5), \
        "mismatch vs reference (default path)"

    # Test 2: H-tiled path with 8-row halo blocks (the large-plane / v7x path),
    # forced small via block_rows, with a wider 5x5 window.
    x2 = jax.random.normal(jax.random.PRNGKey(1), (1, 2, 32, 16), dtype=jnp.float32)
    y2 = jax.block_until_ready(pooling_forward(x2, pool_size=5, block_rows=16))
    assert jnp.allclose(y2, _reference(x2, pool_size=5), atol=1e-5, rtol=1e-5), \
        "mismatch vs reference (H-tiled halo path)"

    print("KERNEL_OK")
</pallas_src>

<mosaic_0001>
module attributes {stable_mosaic.version = 11 : i64} {
  func.func @_pool_kernel(%arg0: i32, %arg1: i32, %arg2: memref<1x16x16xf32, #tpu.memory_space<vmem>>, %arg3: memref<1x16x16xf32, #tpu.memory_space<vmem>>) attributes {dimension_semantics = [#tpu.dimension_semantics<parallel>, #tpu.dimension_semantics<parallel>], iteration_bounds = array<i64: 8, 1>, scalar_prefetch = 0 : i64, scratch_operands = 0 : i64, tpu.core_type = #tpu.core_type<tc>, window_params = [{transform_indices = @transform_0, window_bounds = array<i64: 1, 16, 16>}, {transform_indices = @transform_1, window_bounds = array<i64: 1, 16, 16>}]} {
    %c0 = arith.constant 0 : index
    %c0_0 = arith.constant 0 : index
    %c0_1 = arith.constant 0 : index
    %0 = vector.load %arg2[%c0, %c0_0, %c0_1] : memref<1x16x16xf32, #tpu.memory_space<vmem>>, vector<1x16x16xf32>
    %cst = arith.constant 0.000000e+00 : f32
    %1 = vector.broadcast %cst : f32 to vector<1x16x1xf32>
    %2 = tpu.concatenate %1, %0, %1 in 2 : vector<1x16x1xf32>, vector<1x16x16xf32>, vector<1x16x1xf32> -> vector<1x16x18xf32>
    %3 = vector.extract_strided_slice %2 {offsets = [0, 0, 0], sizes = [1, 16, 16], strides = [1, 1, 1]} : vector<1x16x18xf32> to vector<1x16x16xf32>
    %4 = vector.extract_strided_slice %2 {offsets = [0, 0, 1], sizes = [1, 16, 16], strides = [1, 1, 1]} : vector<1x16x18xf32> to vector<1x16x16xf32>
    %5 = arith.addf %3, %4 : vector<1x16x16xf32>
    %6 = vector.extract_strided_slice %2 {offsets = [0, 0, 2], sizes = [1, 16, 16], strides = [1, 1, 1]} : vector<1x16x18xf32> to vector<1x16x16xf32>
    %7 = arith.addf %5, %6 : vector<1x16x16xf32>
    %cst_2 = arith.constant 0.000000e+00 : f32
    %8 = vector.broadcast %cst_2 : f32 to vector<1x1x16xf32>
    %9 = tpu.concatenate %8, %7, %8 in 1 : vector<1x1x16xf32>, vector<1x16x16xf32>, vector<1x1x16xf32> -> vector<1x18x16xf32>
    %10 = vector.extract_strided_slice %9 {offsets = [0, 0, 0], sizes = [1, 16, 16], strides = [1, 1, 1]} : vector<1x18x16xf32> to vector<1x16x16xf32>
    %11 = vector.extract_strided_slice %9 {offsets = [0, 1, 0], sizes = [1, 16, 16], strides = [1, 1, 1]} : vector<1x18x16xf32> to vector<1x16x16xf32>
    %12 = arith.addf %10, %11 : vector<1x16x16xf32>
    %13 = vector.extract_strided_slice %9 {offsets = [0, 2, 0], sizes = [1, 16, 16], strides = [1, 1, 1]} : vector<1x18x16xf32> to vector<1x16x16xf32>
    %14 = arith.addf %12, %13 : vector<1x16x16xf32>
    %15 = tpu.iota {dimensions = array<i32: 1>} : vector<1x16x16xi32>
    %c0_i32 = arith.constant 0 : i32
    %16 = vector.broadcast %c0_i32 : i32 to vector<1x16x16xi32>
    %17 = arith.addi %15, %16 : vector<1x16x16xi32>
    %18 = tpu.iota {dimensions = array<i32: 2>} : vector<1x16x16xi32>
    %c1_i32 = arith.constant 1 : i32
    %19 = vector.broadcast %c1_i32 : i32 to vector<1x16x16xi32>
    %20 = arith.addi %17, %19 : vector<1x16x16xi32>
    %c15_i32 = arith.constant 15 : i32
    %21 = vector.broadcast %c15_i32 : i32 to vector<1x16x16xi32>
    %22 = arith.minsi %20, %21 : vector<1x16x16xi32>
    %c1_i32_3 = arith.constant 1 : i32
    %23 = vector.broadcast %c1_i32_3 : i32 to vector<1x16x16xi32>
    %24 = arith.subi %17, %23 : vector<1x16x16xi32>
    %c0_i32_4 = arith.constant 0 : i32
    %25 = vector.broadcast %c0_i32_4 : i32 to vector<1x16x16xi32>
    %26 = arith.maxsi %24, %25 : vector<1x16x16xi32>
    %27 = arith.subi %22, %26 : vector<1x16x16xi32>
    %c1_i32_5 = arith.constant 1 : i32
    %28 = vector.broadcast %c1_i32_5 : i32 to vector<1x16x16xi32>
    %29 = arith.addi %27, %28 : vector<1x16x16xi32>
    %c1_i32_6 = arith.constant 1 : i32
    %30 = vector.broadcast %c1_i32_6 : i32 to vector<1x16x16xi32>
    %31 = arith.addi %18, %30 : vector<1x16x16xi32>
    %c15_i32_7 = arith.constant 15 : i32
    %32 = vector.broadcast %c15_i32_7 : i32 to vector<1x16x16xi32>
    %33 = arith.minsi %31, %32 : vector<1x16x16xi32>
    %c1_i32_8 = arith.constant 1 : i32
    %34 = vector.broadcast %c1_i32_8 : i32 to vector<1x16x16xi32>
    %35 = arith.subi %18, %34 : vector<1x16x16xi32>
    %c0_i32_9 = arith.constant 0 : i32
    %36 = vector.broadcast %c0_i32_9 : i32 to vector<1x16x16xi32>
    %37 = arith.maxsi %35, %36 : vector<1x16x16xi32>
    %38 = arith.subi %33, %37 : vector<1x16x16xi32>
    %c1_i32_10 = arith.constant 1 : i32
    %39 = vector.broadcast %c1_i32_10 : i32 to vector<1x16x16xi32>
    %40 = arith.addi %38, %39 : vector<1x16x16xi32>
    %41 = arith.muli %29, %40 : vector<1x16x16xi32>
    %42 = arith.sitofp %41 : vector<1x16x16xi32> to vector<1x16x16xf32>
    %cst_11 = arith.constant 1.000000e+00 : f32
    %43 = vector.broadcast %cst_11 : f32 to vector<1x16x16xf32>
    %44 = arith.divf %43, %42 : vector<1x16x16xf32>
    %45 = arith.mulf %14, %44 : vector<1x16x16xf32>
    %46 = arith.subf %45, %0 : vector<1x16x16xf32>
    %c0_12 = arith.constant 0 : index
    %c0_13 = arith.constant 0 : index
    %c0_14 = arith.constant 0 : index
    %47 = vector.load %arg3[%c0_12, %c0_13, %c0_14] : memref<1x16x16xf32, #tpu.memory_space<vmem>>, vector<1x16x16xf32>
    tpu.vector_store %arg3[%c0_12, %c0_13, %c0_14], %46 {strides = array<i32>} : memref<1x16x16xf32, #tpu.memory_space<vmem>>, vector<1x16x16xf32>,
    return
  }
  func.func @transform_0(%arg0: i32, %arg1: i32) -> (i32, i32, i32) {
    %c0_i32 = arith.constant 0 : i32
    %c0_i32_0 = arith.constant 0 : i32
    return %arg0, %arg1, %c0_i32 : i32, i32, i32
  }
  func.func @transform_1(%arg0: i32, %arg1: i32) -> (i32, i32, i32) {
    %c0_i32 = arith.constant 0 : i32
    %c0_i32_0 = arith.constant 0 : i32
    return %arg0, %arg1, %c0_i32 : i32, i32, i32
  }
}

</mosaic_0001>

<bundles_post_ra>
// kernel: tpu_custom_call.1
= control target key start
LH: loop header
LB: loop body
LE: loop exit
PB: predicated region body
PF: predicated region fallthrough
CT: control target
= control target key end

     0   :  { %6 = vsyncpa [#allocation3], 0  ;;  %s780_s0 = inlined_call_operand.hbm [shape: f32[8,16,16], index: 0, kind: input, shape index: {}]   ;;  %s781_s1 = inlined_call_operand.hbm [shape: f32[8,16,16], index: 1, kind: output, shape index: {}]  }
   0x1   :  { %8 = vsyncpa [#allocation3 + $0x1], 0 }
   0x2   :  { %9 = vsyncpa [#allocation4], 0 }
   0x3   :  { %11 = vsyncpa [#allocation4 + $0x1], 0  ;;  %s595_s6 = smov 0   ;;  %s597_s7 = smov 0  }
   0x4   :  { %s599_s8 = smov 0   ;;  %s601_s9 = smov 0  }
   0x5   :  { %s603_s10 = smov 0   ;;  %s605_s11 = smov 0  }
   0x6 LB: > { %s369_s12 = sadd.s32 4294967295, %s574_s11   ;;  %s370_s13 = sadd.s32 4294967294, %s574_s11   ;;  %s574_s11 = sphi %s605_s11, %s17_s11   ;;  %s570_s10 = sphi %s603_s10, %s795_s10   ;;  %s566_s9 = sphi %s601_s9, %s794_s9   ;;  %s562_s8 = sphi %s599_s8, %s793_s8   ;;  %s558_s7 = sphi %s597_s7, %s792_s7   ;;  %s554_s6 = sphi %s595_s6, %s791_s6  }
   0x7   : > { %s29_s14 = sadd.s32 1, %s570_s10  ;;  %s38_s15 = sadd.s32 1, %s562_s8 }
   0x8   : > { %p31_p0 = scmp.ge.s32.totalorder %s29_s14, 8  ;;  %p45_p1 = scmp.ne.s32.totalorder %s562_s8, %s558_s7 }
   0x9   : > { %p46_p2 = scmp.eq.s32.totalorder %s574_s11, 0  ;;  %p51_p3 = scmp.ne.s32.totalorder %s558_s7, %s554_s6 }
   0xa   : > { %s797_s14 = smov (%p31_p0, %s29_s14), 0  ;;  %p52_p5 = scmp.eq.s32.totalorder %s369_s12, 0 }
   0xb   : > { %p636_p4 = por %p46_p2, %p45_p1  ;;  %s33_s17 = ssub.s32 %s570_s10, %s797_s14 }
   0xc   : > { %p77_p6 = scmp.eq.s32.totalorder %s369_s12, 7  ;;  %p36_p7 = scmp.eq.s32.totalorder %s33_s17, 0 }
   0xd   : > { %p642_p8 = por %p52_p5, %p51_p3  ;;  %p83_p10 = scmp.eq.s32.totalorder %s370_s13, 7 }
   0xe   : > { %p646_p9 = por %p77_p6, %p45_p1  ;;  %p401_p12 = scmp.lt.s32.totalorder %s574_s11, 8 }
   0xf   : > { %s651_s20 = scalar_select %p36_p7, %s562_s8, %s38_s15  }
  0x10   : > { %s785_s19 = scalar_select %p646_p9, 1, 0 }
  0x11   : > { %p653_p11 = por %p83_p10, %p51_p3  ;;  %s103_s22 = sand.u32 1, %s562_s8  }
  0x12   : > { %s373_s23 = sshll.u32 %s103_s22, 4  ;;  %s387_s24 = sshll.u32 %s570_s10, 8 }
  0x13   : > { %s786_s21 = scalar_select %p653_p11, 1, 0 }
  0x14   : > { %s663_s27 = scalar_lea.hbm %s780_s0, %s387_s24  ;;  %s107_s28 = scalar_lea.vmem [#allocation2], %s373_s23 }
  0x15   : > { %s116_s29 = sshll.u32 %s107_s28, 4  ;;  %p669_p13 = pnand %p401_p12, %p636_p4  ;;  %s665_s29 = int_to_ptr.vmem [resolvable:$true] %s116_s29 }
  0x16   : > { %s674_s2 = scalar_lea.sflag [#allocation3], %s103_s22  ;;  %s462_s3 = scalar_lea.hbm %s663_s27, 256 }
  0x17   : > { %p463_p1 = scmp.ne.s32.totalorder %s663_s27, %s462_s3  ;;  %p464_p2 = pneg %p669_p13 }
  0x18   : > { %s467_s12 = scalar_lea.hbm %s780_s0, 2048  ;;  %p468_p4 = scmp.lt.u32.totalorder %s663_s27, %s780_s0 }
  0x19   : > { %p465_p3 = pnand %p464_p2, %p463_p1  ;;  %p469_p6 = scmp.lt.u32.totalorder %s467_s12, %s462_s3 }
  0x1a   : > { %p471_p10 = scmp.lt.u32.totalorder %s462_s3, %s663_s27 }
  0x1b   : > { %p466_p5 = pneg %p465_p3  ;;  %p470_p7 = por %p469_p6, %p468_p4 }
  0x1d   : > { %p472_p12 = por %p471_p10, %p470_p7 }
  0x1f   : > { %p473_p0 = pnand %p472_p12, %p466_p5 }
  0x21   : > { %476 = shalt.err (!%p473_p0)
}
  0x22   : > { %s477_s16 = scalar_lea.vmem %s665_s29, 256  ;;  %s576_s17 = smov [#allocation2]  }
  0x23   : > { %p478_p1 = scmp.ne.s32.totalorder %s665_s29, %s477_s16  ;;  %s482_s22 = sshll.u32 %s576_s17, 4  ;;  %s483_s22 = int_to_ptr.vmem [resolvable:$false] %s482_s22 }
  0x24   : > { %s484_s23 = scalar_lea.vmem %s483_s22, 512  ;;  %p485_p9 = scmp.lt.s32.totalorder %s665_s29, %s483_s22 }
  0x25   : > { %p480_p3 = pnand %p478_p1, %p464_p2  ;;  %p486_p4 = scmp.lt.s32.totalorder %s484_s23, %s477_s16 }
  0x27   : > { %p481_p11 = pneg %p480_p3  ;;  %p487_p6 = por %p486_p4, %p485_p9 }
  0x29   : > { %p488_p7 = pnand %p487_p6, %p481_p11 }
  0x2b   : > { %491 = shalt.err (!%p488_p7)
}
  0x2c   : > { %s577_s24 = smov 128   ;;  %s578_s25 = smov 8  }
  0x2d   : > { %396 = dma.hbm_to_vmem [thread:$0]  (!%p669_p13), %s663_s27, 256, %s665_s29, %s674_s2, %s577_s24, %s577_s24, %s578_s25  }
  0x2e   : > { %p124_p0 = scmp.lt.s32.totalorder %s574_s11, 9  ;;  %p788_p2 = scmp.ge.s32.totalorder %s574_s11, 1 }
  0x30   : > { %p125_p5 = pnand %p788_p2, %p124_p0 }
  0x31   : > { %s706_s26 = sand.u32 (!%p125_p5), 1, %s558_s7  }
  0x32   : > { %128 = sbr.rel (%p125_p5) target bundleno = 330 (0x14a), region = 24  ;;  %s377_s28 = sshll.u32 (!%p125_p5), %s706_s26, 4 }
  0x33   : > { %s131_s3 = scalar_lea.sflag (!%p125_p5), [#allocation3], %s706_s26  ;;  %s134_s4 = scalar_lea.vmem (!%p125_p5), [#allocation2], %s377_s28 }
  0x39   : > { %545 = dma.done.wait (%p642_p8), %s131_s3, 256  }
  0x3a   : > { %547 = vsyncadd (%p642_p8), %s131_s3, 4294967040  ;;  %v716_v0 = vld [vmem:[%s134_s4] sm:$0xff]  ;;  %s579_s27 = smov 1   ;;  %v719_v1 = vld [vmem:[%s134_s4 + $0x8] sm:$0xff]  ;;  %vm165_vm0 = vcmask 7168   ;;  %vm168_vm1 = vcmask 138240   ;;  %v222_v8 = vlaneseq }
  0x3b   : > { %159 = vrot.lane.b32.xlu0 %v716_v0, %s579_s27  ;;  %s580_s29 = smov 126   ;;  %s581_s30 = smov 127   ;;  %vm191_vm6 = vcmask 1040384   ;;  %vm202_vm7 = vcmask 1046528   ;;  %vm212_vm8 = vcmask 1045504   ;;  %vm263_vm9 = vcmask 130048  }
  0x3c   : > { %v223_v9 = vshrl.u32 %v222_v8, 7  ;;  %v226_v10 = vand.u32 127, %v222_v8  ;;  %s388_s18 = sshll.u32 %s566_s9, 8  ;;  %s152_s2 = scalar_lea.vmem [#allocation5], %s377_s28 }
  0x3d   : > { %s282_s5 = sshll.u32 %s152_s2, 4  ;;  %s728_s15 = scalar_lea.hbm %s781_s1, %s388_s18  ;;  %s730_s5 = int_to_ptr.vmem [resolvable:$true] %s282_s5 }
  0x3e   : > { %v224_v11 = vadd.s32 8, %v223_v9  ;;  %v379_v12 = vadd.s32 4294967295, %v223_v9  ;;  %v243_v13 = vadd.s32 1, %v226_v10  ;;  %v381_v14 = vadd.s32 4294967295, %v226_v10  ;;  %s267_s9 = scalar_lea.sflag [#allocation4], %s706_s26  ;;  %s492_s16 = scalar_lea.vmem %s730_s5, 256 }
  0x3f   : > { %161 = vrot.lane.b32.xlu0 %v719_v1, %s579_s27  ;;  %v227_v16 = vadd.s32 1, %v223_v9  ;;  %p493_p8 = scmp.ne.s32.totalorder %s730_s5, %s492_s16  ;;  %p789_p9 = scmp.ne.s32.totalorder %s785_s19, 0 }
  0x40   : > { %v228_v15 = vadd.s32 1, %v224_v11  ;;  %vm235_vm2 = vcmp.gt.s32.totalorder %v379_v12, 0  ;;  %vm244_vm3 = vcmp.lt.s32.totalorder %v243_v13, 15  ;;  %vm247_vm4 = vcmp.gt.s32.totalorder %v381_v14, 0  ;;  %s582_s17 = smov [#allocation5]  }
  0x41   : > { %v380_v17 = vadd.s32 4294967295, %v224_v11  ;;  %v236_v18 = vsel %vm235_vm2, %v379_v12, 0  ;;  %v245_v19 = vsel %vm244_vm3, %v243_v13, 15  ;;  %v248_v20 = vsel %vm247_vm4, %v381_v14, 0  ;;  %p494_p11 = pnand %p493_p8, %p789_p9  ;;  %s496_s22 = sshll.u32 %s582_s17, 4  ;;  %s497_s22 = int_to_ptr.vmem [resolvable:$false] %s496_s22 }
  0x42   : > { %vm231_vm5 = vcmp.lt.s32.totalorder %v228_v15, 15  ;;  %v239_v22 = vsub.s32 %v227_v16, %v236_v18  ;;  %v249_v23 = vsub.s32 %v245_v19, %v248_v20  ;;  %s498_s23 = scalar_lea.vmem %s497_s22, 512  ;;  %p499_p10 = scmp.lt.s32.totalorder %s730_s5, %s497_s22 }
  0x43   : > { %v232_v21 = vsel %vm231_vm5, %v228_v15, 15  ;;  %p495_p13 = pneg %p494_p11  ;;  %p500_p12 = scmp.lt.s32.totalorder %s498_s23, %s492_s16 }
  0x44   : > { %v240_v24 = vsub.s32 %v232_v21, %v380_v17  ;;  %v241_v25 = vadd.s32 1, %v239_v22  ;;  %v250_v26 = vadd.s32 1, %v249_v23 }
  0x45   : > { %p501_p1 = por %p500_p12, %p499_p10 }
  0x46   : > { %v242_v27 = vadd.s32 1, %v240_v24  ;;  %v251_v28 = vmul.u32 %v250_v26, %v241_v25 }
  0x47   : > { %p502_p3 = pnand %p501_p1, %p495_p13 }
  0x48   : > { %v252_v30 = vmul.u32 %v250_v26, %v242_v27  ;;  %v253_v34 = vcvt.s32.f32 %v251_v28 }
  0x4a   : > { %v254_v36 = vcvt.s32.f32 %v252_v30  ;;  %458 = vrcp.f32 %v253_v34 }
  0x4c   : > { %460 = vrcp.f32 %v254_v36 }
  0x54   : > { %v459_v53 = vpop.eup %458 }
  0x56   : > { %v461_v56 = vpop.eup %460 }
  0xad   : > { %v160_v2 = vpop.permute.xlu0 %159 }
  0xae   : > { %v166_v3 = vsel %vm165_vm0, 0.0, %v160_v2 }
  0xaf   : > { %v169_v4 = vsel %vm168_vm1, %v166_v3, 0.0 }
  0xb0   : > { %181 = vrot.lane.b32.xlu0 %v169_v4, %s580_s29  ;;  %173 = vrot.lane.b32.xlu1 %v169_v4, %s581_s30 }
  0xb1   : > { %v162_v5 = vpop.permute.xlu0 %161 }
  0xb2   : > { %v167_v6 = vsel %vm165_vm0, 0.0, %v162_v5 }
  0xb3   : > { %v170_v7 = vsel %vm168_vm1, %v167_v6, 0.0 }
  0xb4   : > { %175 = vrot.lane.b32.xlu1 %v170_v7, %s581_s30 }
  0xb8   : > { %183 = vrot.lane.b32.xlu1 %v170_v7, %s580_s29 }
 0x122   : > { %v174_v29 = vpop.permute.xlu1 %173  ;;  %v182_v32 = vpop.permute.xlu0 %181 }
 0x123   : > { %v179_v31 = vadd.f32 %v174_v29, %v169_v4 }
 0x125   : > { %v187_v33 = vadd.f32 %v182_v32, %v179_v31 }
 0x126   : > { %v176_v35 = vpop.permute.xlu1 %175 }
 0x127   : > { %v192_v37 = vrot.slane %v187_v33, 7  ;;  %v180_v38 = vadd.f32 %v176_v35, %v170_v7 }
 0x129   : > { %v198_v41 = vsel %vm191_vm6, 0.0, %v192_v37 }
 0x12a   : > { %v184_v39 = vpop.permute.xlu1 %183  ;;  %v203_v43 = vrot.slane %v198_v41, 1  ;;  %v213_v50 = vrot.slane %v198_v41, 2 }
 0x12b   : > { %v188_v40 = vadd.f32 %v184_v39, %v180_v38 }
 0x12d   : > { %v193_v42 = vrot.slane %v188_v40, 7 }
 0x12f   : > { %v194_v44 = vsel %vm191_vm6, %v192_v37, %v193_v42  ;;  %v199_v45 = vsel %vm191_vm6, %v193_v42, 0.0 }
 0x130   : > { %v204_v46 = vrot.slane %v194_v44, 1  ;;  %v206_v47 = vrot.slane %v199_v45, 1  ;;  %v214_v48 = vrot.slane %v194_v44, 2  ;;  %v216_v49 = vrot.slane %v199_v45, 2 }
 0x132   : > { %v205_v51 = vsel %vm202_vm7, %v203_v43, %v204_v46  ;;  %v207_v52 = vsel %vm202_vm7, %v204_v46, %v206_v47  ;;  %v215_v57 = vsel %vm212_vm8, %v213_v50, %v214_v48  ;;  %v217_v58 = vsel %vm212_vm8, %v214_v48, %v216_v49 }
 0x133   : > { %v210_v54 = vadd.f32 %v205_v51, %v198_v41  ;;  %v211_v55 = vadd.f32 %v207_v52, %v194_v44 }
 0x135   : > { %v220_v59 = vadd.f32 %v215_v57, %v210_v54  ;;  %v221_v60 = vadd.f32 %v217_v58, %v211_v55 }
 0x137   : > { %v259_v61 = vmul.f32 %v459_v53, %v220_v59  ;;  %v260_v62 = vmul.f32 %v461_v56, %v221_v60 }
 0x139   : > { %v261_v63 = vsub.f32 %v259_v61, %v716_v0  ;;  %v262_v2 = vsub.f32 %v260_v62, %v719_v1 }
 0x13b   : > { %264 = vst.msk [vmem:[%s152_s2] sm:$0xff] %vm263_vm9, %v261_v63  ;;  %265 = vst.msk [vmem:[%s152_s2 + $0x8] sm:$0xff] %vm263_vm9, %v262_v2 }
 0x13c   : > { %505 = shalt.err (!%p502_p3)
}
 0x13d   : > { %s506_s24 = scalar_lea.hbm %s728_s15, 256  ;;  %s510_s3 = scalar_lea.hbm %s781_s1, 2048 }
 0x13e   : > { %p507_p4 = scmp.ne.s32.totalorder %s728_s15, %s506_s24  ;;  %p511_p0 = scmp.lt.u32.totalorder %s728_s15, %s781_s1 }
 0x13f   : > { %p512_p2 = scmp.lt.u32.totalorder %s510_s3, %s506_s24  ;;  %p514_p8 = scmp.lt.u32.totalorder %s506_s24, %s728_s15 }
 0x140   : > { %p508_p6 = pnand %p507_p4, %p789_p9 }
 0x141   : > { %p513_p5 = por %p512_p2, %p511_p0 }
 0x142   : > { %p509_p7 = pneg %p508_p6 }
 0x143   : > { %p515_p11 = por %p514_p8, %p513_p5 }
 0x145   : > { %p516_p13 = pnand %p515_p11, %p509_p7 }
 0x147   : > { %519 = shalt.err (!%p516_p13)
}
 0x148   : > { %s583_s29 = smov 128   ;;  %s584_s30 = smov 8  }
 0x149   : > { %391 = dma.vmem_to_hbm [thread:$0]  (%p789_p9), %s730_s5, 256, %s728_s15, %s267_s9, %s583_s29, %s583_s29, %s584_s30  }
 0x14a PF: > { %p402_p10 = scmp.ge.s32.totalorder %s574_s11, 2  ;;  %s297_s18 = sand.u32 1, %s554_s6  }
 0x14b   : > { %p790_p12 = scmp.ne.s32.totalorder %s786_s21, 0  ;;  %s298_s2 = scalar_lea.sflag [#allocation4], %s297_s18 }
 0x14d   : > { %p398_p1 = pnand %p402_p10, %p790_p12 }
 0x14f   : > { %549 = dma.done.wait (!%p398_p1), %s298_s2, 256  }
 0x150   : > { %551 = vsyncadd (!%p398_p1), %s298_s2, 4294967040  ;;  %s17_s11 = sadd.s32 1, %s574_s11   ;;  %s791_s6 = smov %s558_s7 }
 0x151   : > { %p14_p3 = scmp.ge.s32.totalorder %s17_s11, 10   ;;  %s792_s7 = smov %s562_s8 }
 0x152   : > { %s793_s8 = smov %s651_s20  ;;  %s794_s9 = smov %s570_s10 }
 0x153   : > { %s795_s10 = smov %s797_s14  ;;  %16 = sbr.rel (!%p14_p3) target bundleno = 6 (0x6), region = 69 }
 0x15a   :  { %303 = vsyncpa [#allocation3], 1 }
 0x15b   :  { %305 = vsyncpa [#allocation3 + $0x1], 1 }
 0x15c   :  { %306 = vsyncpa [#allocation4], 1 }
 0x15d   :  { %308 = vsyncpa [#allocation4 + $0x1], 1 }

</bundles_post_ra>
